<compile_context>
chip_gen: v5e
topology: v5e:2x2
jax: 0.10.0
libtpu: 0.0.40
codegen_flags: <defaults>
</compile_context>

<pallas_src>
import jax
import jax.numpy as jnp
from jax.experimental import pallas as pl
from jax.experimental.pallas import tpu as pltpu


# ---------------------------------------------------------------------------
# Pallas kernels
# ---------------------------------------------------------------------------
def _hidden_kernel(emb_ref, w1_ref, b1_ref, h_ref):
    """h = tanh(emb @ W1 + b1) for one group, stored as bf16.

    emb_ref : (1, T, D) f32    embedding table rows (== Embedding(arange(T)))
    w1_ref  : (1, D, M) f32
    b1_ref  : (1, 1, M) f32
    h_ref   : (1, T, M) bf16   hidden activation, streamed to the second stage
    """
    h = jnp.dot(emb_ref[0], w1_ref[0], preferred_element_type=jnp.float32)
    h_ref[0] = jnp.tanh(h + b1_ref[0]).astype(h_ref.dtype)


def _second_kernel(h_ref, w2_ref, b2_ref, out_ref):
    """out = h @ W2_tile + b2_tile for one (group, column-tile) grid point.

    h_ref   : (1, T, M)  bf16  (resident over the column axis)
    w2_ref  : (1, M, TN) bf16  column tile of the second linear weight
    b2_ref  : (1, 1, TN) bf16
    out_ref : (1, T, TN) f32   lane-dense output tile
    """
    y = jnp.dot(h_ref[0], w2_ref[0], preferred_element_type=jnp.float32)
    out_ref[0] = (y + b2_ref[0].astype(jnp.float32)).astype(out_ref.dtype)


# ---------------------------------------------------------------------------
# Per-generation sizing helpers
# ---------------------------------------------------------------------------
def _vmem_limit_bytes():
    """Explicit scoped-VMEM budget: min(half of physical VMEM, 64 MiB).
    -> 64 MiB on v5e/v6e (128 MiB parts), 32 MiB on v7x (64 MiB part)."""
    cap = 128 * 1024 * 1024
    try:
        info = pltpu.get_tpu_info()
        cap = int(getattr(info, "vmem_capacity_bytes", cap))
    except Exception:
        pass
    return int(min(cap // 2, 64 * 1024 * 1024))


def _pick_col_tile(T, M, LD, vmem_limit):
    """Lane-dense column tile (multiple of 128) of the second linear output, sized so
    that double-buffered (W2 bf16 + b2 bf16 + out f32) tiles plus the resident bf16
    hidden fit within ~70% of the VMEM budget. Returns (tn, padded_LD)."""
    budget = int(vmem_limit * 0.7)
    resident = 2 * T * M * 2                      # h bf16, double-buffered
    per_col = 2 * (M * 2 + 2 + T * 4)             # W2 + b2 (bf16) + out (f32), x2 buffers
    tn = (max(budget - resident, 0) // max(per_col, 1)) // 128 * 128
    tn = int(max(128, min(tn, 8192)))
    ld_pad128 = pl.cdiv(LD, 128) * 128
    if tn >= ld_pad128:
        return ld_pad128, ld_pad128               # single column step, full padded width
    ld_pad = pl.cdiv(LD, tn) * tn
    return tn, ld_pad


# ---------------------------------------------------------------------------
# Fused forward for a stack of same-length branches
# ---------------------------------------------------------------------------
def fused_prefix_mlp(tables, w1, b1, w2p, b2p, *, tn, vmem_limit):
    """tables: (G,T,D) f32; w1: (G,D,M) f32; b1: (G,1,M) f32;
    w2p: (G,M,LDp) bf16 (column-padded); b2p: (G,1,LDp) bf16.

    Returns (G, T, LDp) f32 = tanh(tables @ w1 + b1) @ w2p + b2p, per group.
    """
    G, T, D = tables.shape
    M = w1.shape[-1]
    LDp = w2p.shape[-1]
    assert LDp % tn == 0

    # Stage 1: tiny matmul, computed once per group (no recomputation across column tiles).
    h = pl.pallas_call(
        _hidden_kernel,
        out_shape=jax.ShapeDtypeStruct((G, T, M), jnp.bfloat16),
        grid=(G,),
        in_specs=[
            pl.BlockSpec((1, T, D), lambda g: (g, 0, 0)),
            pl.BlockSpec((1, D, M), lambda g: (g, 0, 0)),
            pl.BlockSpec((1, 1, M), lambda g: (g, 0, 0)),
        ],
        out_specs=pl.BlockSpec((1, T, M), lambda g: (g, 0, 0)),
        compiler_params=pltpu.CompilerParams(
            dimension_semantics=("parallel",),
            vmem_limit_bytes=vmem_limit),
    )(tables, w1, b1)

    # Stage 2: bandwidth-bound W2 streaming; both axes independent -> both "parallel".
    out = pl.pallas_call(
        _second_kernel,
        out_shape=jax.ShapeDtypeStruct((G, T, LDp), jnp.float32),
        grid=(G, LDp // tn),
        in_specs=[
            pl.BlockSpec((1, T, M), lambda g, j: (g, 0, 0)),     # h, resident over j
            pl.BlockSpec((1, M, tn), lambda g, j: (g, 0, j)),    # W2 column tile (bf16)
            pl.BlockSpec((1, 1, tn), lambda g, j: (g, 0, j)),    # b2 column tile (bf16)
        ],
        out_specs=pl.BlockSpec((1, T, tn), lambda g, j: (g, 0, j)),
        compiler_params=pltpu.CompilerParams(
            dimension_semantics=("parallel", "parallel"),
            vmem_limit_bytes=vmem_limit),
    )(h, w2p, b2p)
    return out


# ---------------------------------------------------------------------------
# Module-equivalent (parameters + forward)
# ---------------------------------------------------------------------------
class MLP_BiasJax:
    def __init__(self, *, num_hidden_layers, n_head, n_embd, mid_dim, attn_bn,
                 max_source_length, max_target_length, prefix_dropout, key):
        self.match_n_layer = num_hidden_layers
        self.match_n_head = n_head
        self.n_embd = n_embd
        self.match_n_embd = n_embd // n_head
        self.mid_dim = mid_dim
        self.attn_bn = attn_bn
        self.prefix_dropout = prefix_dropout
        self.src_len = max_source_length + 2
        self.tgt_len = max_target_length + 2
        L = num_hidden_layers

        keys = jax.random.split(key, 9)
        std = 0.01  # init_bias_mlp: Linear weights ~ N(0, 0.01), biases zero

        def lin_w(k, fan_in, fan_out):
            return std * jax.random.normal(k, (fan_in, fan_out), jnp.float32)

        def emb_w(k, num, dim):  # nn.Embedding default init: N(0, 1)
            return jax.random.normal(k, (num, dim), jnp.float32)

        # 'self' branch: wte + control_trans
        self.wte = emb_w(keys[0], self.tgt_len, n_embd)
        self.ct_w1 = lin_w(keys[1], n_embd, mid_dim)
        self.ct_b1 = jnp.zeros((mid_dim,), jnp.float32)
        self.ct_w2 = lin_w(keys[2], mid_dim, L * n_embd)
        self.ct_b2 = jnp.zeros((L * n_embd,), jnp.float32)
        # 'encoder_decoder' branch: wte2 + control_trans2
        self.wte2 = emb_w(keys[3], self.tgt_len, n_embd)
        self.ct2_w1 = lin_w(keys[4], n_embd, mid_dim)
        self.ct2_b1 = jnp.zeros((mid_dim,), jnp.float32)
        self.ct2_w2 = lin_w(keys[5], mid_dim, L * n_embd)
        self.ct2_b2 = jnp.zeros((L * n_embd,), jnp.float32)
        # 'encoder' branch: wte_enc + control_trans_enc
        self.wte_enc = emb_w(keys[6], self.src_len, n_embd)
        self.cte_w1 = lin_w(keys[7], n_embd, mid_dim)
        self.cte_b1 = jnp.zeros((mid_dim,), jnp.float32)
        self.cte_w2 = lin_w(keys[8], mid_dim, L * n_embd)
        self.cte_b2 = jnp.zeros((L * n_embd,), jnp.float32)

        # Pre-stack / pre-cast / pre-pad the kernel operands ONCE (not per forward call).
        self._build_stacks()

    def _build_stacks(self):
        L, D, M = self.match_n_layer, self.n_embd, self.mid_dim
        LD = L * D
        self._vmem_limit = _vmem_limit_bytes()

        branches_tgt = [
            (self.wte, self.ct_w1, self.ct_b1, self.ct_w2, self.ct_b2, 'self'),
            (self.wte2, self.ct2_w1, self.ct2_b1, self.ct2_w2, self.ct2_b2,
             'encoder_decoder'),
        ]
        branch_enc = (self.wte_enc, self.cte_w1, self.cte_b1, self.cte_w2, self.cte_b2,
                      'encoder')

        if self.src_len == self.tgt_len:
            groups = [(self.tgt_len, branches_tgt + [branch_enc])]   # one fused call, G=3
        else:
            groups = [(self.tgt_len, branches_tgt), (self.src_len, [branch_enc])]

        self._stacks = []
        for T, branches in groups:
            G = len(branches)
            tn, ld_pad = _pick_col_tile(T, M, LD, self._vmem_limit)
            tables = jnp.stack([b[0] for b in branches])                         # (G,T,D) f32
            w1 = jnp.stack([b[1] for b in branches])                              # (G,D,M) f32
            b1 = jnp.stack([b[2] for b in branches]).reshape(G, 1, M)             # (G,1,M) f32
            w2 = jnp.stack([b[3] for b in branches]).astype(jnp.bfloat16)         # (G,M,LD) bf16
            b2 = jnp.stack([b[4] for b in branches]).astype(jnp.bfloat16).reshape(G, 1, LD)
            if ld_pad != LD:   # lane-dense, unmasked stores; padded columns sliced off later
                w2 = jnp.pad(w2, ((0, 0), (0, 0), (0, ld_pad - LD)))
                b2 = jnp.pad(b2, ((0, 0), (0, 0), (0, ld_pad - LD)))
            self._stacks.append(dict(
                T=T, tn=tn, tables=tables, w1=w1, b1=b1, w2=w2, b2=b2,
                names=[b[5] for b in branches]))

    def forward(self, bsz, nsamples=1):
        # bsz / nsamples are unused by the torch forward; kept for signature parity.
        del bsz, nsamples
        L, D = self.match_n_layer, self.n_embd
        LD = L * D

        branch_out = {}
        for st in self._stacks:
            y = fused_prefix_mlp(st['tables'], st['w1'], st['b1'], st['w2'], st['b2'],
                                 tn=st['tn'], vmem_limit=self._vmem_limit)
            y = y[:, :, :LD]                                  # drop padded columns
            for gi, name in enumerate(st['names']):
                branch_out[name] = y[gi].reshape(st['T'], L, D)

        # nn.Dropout(prefix_dropout): identity at inference.
        # TODO(synk): training-mode dropout (pltpu.prng_* masking) not implemented.

        result = []
        for ii in range(L):
            result.append({
                'encoder': branch_out['encoder'][:, ii, :],
                'self': branch_out['self'][:, ii, :],
                'encoder_decoder': branch_out['encoder_decoder'][:, ii, :],
            })
        return result


# ---------------------------------------------------------------------------
# Pure-JAX reference for correctness check (f32 throughout)
# ---------------------------------------------------------------------------
def _ref_mlp(table, w1, b1, w2, b2):
    return jnp.tanh(table @ w1 + b1) @ w2 + b2


if __name__ == "__main__":
    L, H, D, MID, ATTN_BN = 2, 4, 32, 16, 8
    # Two configs: equal lengths (single fused call, G=3) and unequal (two calls).
    for (max_src, max_tgt) in [(8, 8), (14, 8)]:
        mod = MLP_BiasJax(num_hidden_layers=L, n_head=H, n_embd=D, mid_dim=MID,
                          attn_bn=ATTN_BN, max_source_length=max_src,
                          max_target_length=max_tgt, prefix_dropout=0.0,
                          key=jax.random.PRNGKey(0))

        result = mod.forward(bsz=2, nsamples=1)
        jax.block_until_ready(result)

        ref_self = _ref_mlp(mod.wte, mod.ct_w1, mod.ct_b1,
                            mod.ct_w2, mod.ct_b2).reshape(mod.tgt_len, L, D)
        ref_xdec = _ref_mlp(mod.wte2, mod.ct2_w1, mod.ct2_b1,
                            mod.ct2_w2, mod.ct2_b2).reshape(mod.tgt_len, L, D)
        ref_enc = _ref_mlp(mod.wte_enc, mod.cte_w1, mod.cte_b1,
                           mod.cte_w2, mod.cte_b2).reshape(mod.src_len, L, D)

        # bf16 streaming of h/W2 -> compare against the f32 reference with a loosened tol.
        ATOL, RTOL = 1e-3, 5e-2
        for ii in range(L):
            assert result[ii]['self'].shape == (mod.tgt_len, D)
            assert result[ii]['encoder'].shape == (mod.src_len, D)
            assert jnp.allclose(result[ii]['self'], ref_self[:, ii, :],
                                atol=ATOL, rtol=RTOL)
            assert jnp.allclose(result[ii]['encoder_decoder'], ref_xdec[:, ii, :],
                                atol=ATOL, rtol=RTOL)
            assert jnp.allclose(result[ii]['encoder'], ref_enc[:, ii, :],
                                atol=ATOL, rtol=RTOL)

    print("KERNEL_OK")
</pallas_src>

<mosaic_0001>
module attributes {stable_mosaic.version = 11 : i64} {
  func.func @_hidden_kernel(%arg0: i32, %arg1: memref<1x10x32xf32, #tpu.memory_space<vmem>>, %arg2: memref<1x32x16xf32, #tpu.memory_space<vmem>>, %arg3: memref<1x1x16xf32, #tpu.memory_space<vmem>>, %arg4: memref<1x10x16xbf16, #tpu.memory_space<vmem>>) attributes {dimension_semantics = [#tpu.dimension_semantics<parallel>], iteration_bounds = array<i64: 3>, scalar_prefetch = 0 : i64, scratch_operands = 0 : i64, tpu.core_type = #tpu.core_type<tc>, window_params = [{transform_indices = @transform_0, window_bounds = array<i64: 1, 10, 32>}, {transform_indices = @transform_1, window_bounds = array<i64: 1, 32, 16>}, {transform_indices = @transform_2, window_bounds = array<i64: 1, 1, 16>}, {transform_indices = @transform_3, window_bounds = array<i64: 1, 10, 16>}]} {
    %c0 = arith.constant 0 : index
    %c0_0 = arith.constant 0 : index
    %c0_1 = arith.constant 0 : index
    %0 = vector.load %arg1[%c0, %c0_0, %c0_1] : memref<1x10x32xf32, #tpu.memory_space<vmem>>, vector<1x10x32xf32>
    %1 = vector.shape_cast %0 : vector<1x10x32xf32> to vector<10x32xf32>
    %c0_2 = arith.constant 0 : index
    %c0_3 = arith.constant 0 : index
    %c0_4 = arith.constant 0 : index
    %2 = vector.load %arg2[%c0_2, %c0_3, %c0_4] : memref<1x32x16xf32, #tpu.memory_space<vmem>>, vector<1x32x16xf32>
    %3 = vector.shape_cast %2 : vector<1x32x16xf32> to vector<32x16xf32>
    %cst = arith.constant dense<0.000000e+00> : vector<10x16xf32>
    %4 = tpu.matmul %1, %3, %cst {dimension_numbers = #tpu.dot_dimension_numbers<[1], [0], [0], [1], [0, 0, 1, 1], [], []>} : vector<10x32xf32>, vector<32x16xf32>, vector<10x16xf32> -> vector<10x16xf32>
    %c0_5 = arith.constant 0 : index
    %c0_6 = arith.constant 0 : index
    %c0_7 = arith.constant 0 : index
    %5 = vector.load %arg3[%c0_5, %c0_6, %c0_7] : memref<1x1x16xf32, #tpu.memory_space<vmem>>, vector<1x1x16xf32>
    %6 = vector.shape_cast %5 : vector<1x1x16xf32> to vector<1x16xf32>
    %7 = vector.broadcast %6 : vector<1x16xf32> to vector<10x16xf32>
    %8 = arith.addf %4, %7 : vector<10x16xf32>
    %9 = math.tanh %8 : vector<10x16xf32>
    %10 = arith.truncf %9 : vector<10x16xf32> to vector<10x16xbf16>
    %c0_8 = arith.constant 0 : index
    %c0_9 = arith.constant 0 : index
    %c0_10 = arith.constant 0 : index
    %11 = vector.load %arg4[%c0_8, %c0_9, %c0_10] : memref<1x10x16xbf16, #tpu.memory_space<vmem>>, vector<1x10x16xbf16>
    %12 = vector.shape_cast %11 : vector<1x10x16xbf16> to vector<10x16xbf16>
    %13 = vector.shape_cast %10 : vector<10x16xbf16> to vector<1x10x16xbf16>
    tpu.vector_store %arg4[%c0_8, %c0_9, %c0_10], %13 {strides = array<i32>} : memref<1x10x16xbf16, #tpu.memory_space<vmem>>, vector<1x10x16xbf16>,
    return
  }
  func.func @transform_0(%arg0: i32) -> (i32, i32, i32) {
    %c0_i32 = arith.constant 0 : i32
    %c0_i32_0 = arith.constant 0 : i32
    %c0_i32_1 = arith.constant 0 : i32
    return %arg0, %c0_i32, %c0_i32_0 : i32, i32, i32
  }
  func.func @transform_1(%arg0: i32) -> (i32, i32, i32) {
    %c0_i32 = arith.constant 0 : i32
    %c0_i32_0 = arith.constant 0 : i32
    %c0_i32_1 = arith.constant 0 : i32
    return %arg0, %c0_i32, %c0_i32_0 : i32, i32, i32
  }
  func.func @transform_2(%arg0: i32) -> (i32, i32, i32) {
    %c0_i32 = arith.constant 0 : i32
    %c0_i32_0 = arith.constant 0 : i32
    %c0_i32_1 = arith.constant 0 : i32
    return %arg0, %c0_i32, %c0_i32_0 : i32, i32, i32
  }
  func.func @transform_3(%arg0: i32) -> (i32, i32, i32) {
    %c0_i32 = arith.constant 0 : i32
    %c0_i32_0 = arith.constant 0 : i32
    %c0_i32_1 = arith.constant 0 : i32
    return %arg0, %c0_i32, %c0_i32_0 : i32, i32, i32
  }
}

</mosaic_0001>

<bundles_post_ra>
// kernel: tpu_custom_call.1
= control target key start
LH: loop header
LB: loop body
LE: loop exit
PB: predicated region body
PF: predicated region fallthrough
CT: control target
= control target key end

     0   :  { %s392_s12 = smov 0   ;;  %s421_s0 = inlined_call_operand.vmem [shape: f32[3,10,32], index: 0, kind: input, shape index: {}]   ;;  %s422_s1 = inlined_call_operand.vmem [shape: f32[3,32,16], index: 1, kind: input, shape index: {}]   ;;  %s423_s2 = inlined_call_operand.vmem [shape: f32[3,1,16], index: 2, kind: input, shape index: {}]   ;;  %s424_s3 = inlined_call_operand.vmem [shape: bf16[3,10,16], index: 3, kind: output, shape index: {}]  }
   0x1 LB: > { %s329_s13 = sadd.s32 4294967295, %s370_s12   ;;  %p333_p0 = scmp.ge.s32.totalorder %s370_s12, 1  ;;  %s370_s12 = sphi %s392_s12, %s13_s12  }
   0x2   : > { %p155_p1 = scmp.lt.s32.totalorder %s370_s12, 4 }
   0x4   : > { %p156_p2 = pnand %p333_p0, %p155_p1 }
   0x5   : > { %p187_p3 = scmp.lt.s32.totalorder (!%p156_p2), %s329_s13, 2 }
   0x6   : > { %159 = sbr.rel (%p156_p2) target bundleno = 161 (0xa1), region = 32 }
   0xb   : > { %s426_s13 = smov (!%p187_p3, %s329_s13), 2  ;;  %vm215_vm0 = vcmask 261120   ;;  %vm249_vm1 = vcmask 125952   ;;  %vm251_vm2 = vcmask 122880  }
   0xc   : > { %s345_s14 = sshll.u32 %s426_s13, 5  ;;  %s344_s18 = sshll.u32 %s426_s13, 4 }
   0xd   : > { %s196_s17 = scalar_lea.vmem %s422_s1, %s345_s14  ;;  %s199_s21 = scalar_lea.vmem %s423_s2, %s426_s13 }
   0xe   : > { %v210_v0 = vld [vmem:[%s196_s17 + $0x18] sm:$0xff]  ;;  %v209_v1 = vld [vmem:[%s196_s17 + $0x10] sm:$0xff]  ;;  %v208_v2 = vld [vmem:[%s196_s17 + $0x8] sm:$0xff]  ;;  %s191_s24 = scalar_lea.vmem %s421_s0, %s344_s18  ;;  %s346_s25 = sshll.u32 %s426_s13, 3 }
   0xf   : > { %234 = vmatpush.msra.mxu0 %v210_v0  ;;  %347 = vmatpush.msra.mxu1 %v210_v0  ;;  %v207_v3 = vld [vmem:[%s196_s17] sm:$0xff]  ;;  %v206_v5 = vld [vmem:[%s191_s24 + $0x8] sm:$0x3]  ;;  %s204_s28 = scalar_lea.vmem %s424_s3, %s346_s25 }
  0x10   : > { %v205_v4 = vld [vmem:[%s191_s24] sm:$0xff] }
  0x11   : > { %235 = vmatpush.msra.mxu0 %v209_v1  ;;  %348 = vmatpush.msra.mxu1 %v209_v1  ;;  %v359_v6 = vld [vmem:[%s199_s21] ss:$0 sm:$0xff] }
  0x13   : > { %236 = vmatpush.msra.mxu0 %v208_v2  ;;  %349 = vmatpush.msra.mxu1 %v208_v2 }
  0x15   : > { %237 = vmatpush.msra.mxu0 %v207_v3  ;;  %350 = vmatpush.msra.mxu1 %v207_v3 }
  0x16   : > { %340 = vmatmul.msk.f32.vlgmr.msra.gmra.mxu0 %vm215_vm0, %v205_v4  ;;  %341 = vmatmul.msk.f32.vlgmr.msra.gmra.mxu1 %vm215_vm0, %v206_v5 }
  0x93   : > { %v239_v7 = vpop.f32.mrf.mxu0  ;;  %v242_v8 = vpop.f32.mrf.mxu1 }
  0x94   : > { %v240_v9 = vadd.f32 %v359_v6, %v239_v7  ;;  %v243_v10 = vadd.f32 %v359_v6, %v242_v8 }
  0x96   : > { %360 = vtanh.f32 %v240_v9 }
  0x97   : > { %362 = vtanh.f32 %v243_v10 }
  0x9c   : > { %v361_v11 = vpop.eup %360 }
  0x9d   : > { %v363_v12 = vpop.eup %362  ;;  %v247_v13 = vpack.c.bf16 %v361_v11, %v361_v11 }
  0x9e   : > { %v248_v14 = vpack.c.bf16 %v363_v12, %v363_v12 }
  0x9f   : > { %250 = vst.msk [vmem:[%s204_s28] sm:$0xf] %vm249_vm1, %v247_v13 }
  0xa0   : > { %252 = vst.msk [vmem:[%s204_s28 + $0x4] sm:$0x1] %vm251_vm2, %v248_v14 }
  0xa1 PF: > { %s13_s12 = sadd.s32 1, %s370_s12  }
  0xa2   : > { %p10_p4 = scmp.ge.s32.totalorder %s13_s12, 5  }
  0xa4   :  { %12 = sbr.rel (!%p10_p4) target bundleno = 1 (0x1), region = 68 }

</bundles_post_ra>
